<compile_context>
chip_gen: v5e
topology: v5e:2x2
jax: 0.10.0
libtpu: 0.0.40
codegen_flags: <defaults>
</compile_context>

<pallas_src>
import functools

import jax
import jax.numpy as jnp
from jax.experimental import pallas as pl
from jax.experimental.pallas import tpu as pltpu

EPS = 1e-6          # F.pairwise_distance default eps (added to the elementwise diff)
_MIB = 1024 * 1024


def _contrastive_loss_kernel(o1_ref, o2_ref, lbl_ref, out_ref, acc_ref, *,
                             batch, margin, block_rows, steps_per_split,
                             needs_mask):
    """Grid = (split, step). acc_ref is a per-core (1, block_rows) f32 accumulator."""
    step = pl.program_id(1)

    @pl.when(step == 0)
    def _init():
        acc_ref[...] = jnp.zeros_like(acc_ref)

    # Main (TB, D) elementwise stage; upcast in-kernel so HBM traffic stays at
    # the inputs' native width.
    o1 = o1_ref[...].astype(jnp.float32)
    o2 = o2_ref[...].astype(jnp.float32)
    diff = o1 - o2 + EPS                        # (TB, D)
    diff_sq = diff * diff                       # (TB, D) f32

    # Row reduction over D on the idle MXU -> lane-dense (1, TB) result.
    ones = jnp.ones((1, diff_sq.shape[-1]), jnp.float32)
    d2 = jax.lax.dot_general(
        ones, diff_sq,
        dimension_numbers=(((1,), (1,)), ((), ())),
        preferred_element_type=jnp.float32,
        precision=jax.lax.Precision.HIGHEST)    # (1, TB) squared distance

    d = jnp.sqrt(d2)                            # (1, TB) euclidean distance (EUP)
    lbl = lbl_ref[...].astype(jnp.float32)      # (1, TB) lane-major label
    hinge = jnp.maximum(margin - d, 0.0)        # clamp(margin - d, min=0)
    per_row = (1.0 - lbl) * d2 + lbl * (hinge * hinge)   # (1, TB), reuses d2

    if needs_mask:
        # Only tiles whose logical end exceeds the true batch pay for masking
        # (covers both the ragged last block and clamped fully-padded blocks).
        row_start = (pl.program_id(0) * steps_per_split + step) * block_rows

        @pl.when(row_start + block_rows <= batch)
        def _full_tile():
            acc_ref[...] += per_row

        @pl.when(row_start + block_rows > batch)
        def _ragged_tile():
            lane = jax.lax.broadcasted_iota(jnp.int32, per_row.shape, 1)
            acc_ref[...] += jnp.where(row_start + lane < batch, per_row, 0.0)
    else:
        acc_ref[...] += per_row

    @pl.when(step == pl.num_programs(1) - 1)
    def _finalize():
        # Single cross-lane reduce per split; wrapper combines the partials.
        out_ref[...] = jnp.sum(acc_ref[...]).reshape(1, 1, 1)


def _vmem_capacity_bytes():
    try:
        info = pltpu.get_tpu_info()
        cap = getattr(info, "vmem_capacity_bytes", None)
        if cap:
            return int(cap)
    except Exception:
        pass
    return 64 * _MIB      # conservative: v7x physical VMEM per TensorCore


def contrastive_loss(output1, output2, label, *, margin=1.0, block_rows=None,
                     num_splits=2):
    """output1, output2: (B, D); label: (B,) (or (B,1)). Returns scalar mean loss."""
    B, D = output1.shape
    assert output2.shape == (B, D)
    itemsize = jnp.dtype(output1.dtype).itemsize

    # VMEM footprint accounting uses lane-padded D (VMEM rows pad to 128 lanes);
    # we deliberately do NOT pre-pad D in HBM (extra HBM pass on a mem-bound op).
    padded_D = ((max(D, 1) + 127) // 128) * 128
    bytes_per_row = padded_D * itemsize

    # Generation-aware tile budget for 2 inputs x 2 double-buffers.
    vmem_cap = _vmem_capacity_bytes()
    budget = min(24 * _MIB, vmem_cap // 3)

    if block_rows is None:
        block_rows = max(1, budget // (4 * bytes_per_row))
    block_rows = min(int(block_rows), 8192)
    # Layout legality: the lane-major (1, block_rows) label block requires
    # block_rows % 128 == 0 unless the block spans the full batch.
    if block_rows >= B:
        block_rows = B
    else:
        block_rows = max(128, (block_rows // 128) * 128)
        if block_rows >= B:
            block_rows = B
    # TODO(synk): for huge D where even a 128-row tile overflows VMEM, tile D as a
    # second "arbitrary" grid axis reducing into a per-row d2 scratch.

    total_blocks = pl.cdiv(B, block_rows)
    num_splits = max(1, min(int(num_splits), total_blocks))
    steps = pl.cdiv(total_blocks, num_splits)
    last_block = total_blocks - 1
    needs_mask = num_splits * steps * block_rows > B

    if num_splits * steps == total_blocks:
        def blk(c, i):
            return c * steps + i
    else:
        def blk(c, i):   # clamp fully-padded logical blocks (their rows get masked)
            return jnp.minimum(c * steps + i, last_block)

    label_lane = jnp.reshape(label, (1, B)).astype(jnp.float32)

    kernel = functools.partial(
        _contrastive_loss_kernel,
        batch=B, margin=float(margin), block_rows=block_rows,
        steps_per_split=steps, needs_mask=needs_mask)

    # Scoped-VMEM limit covering the pipelined footprint (+slack), kept inside
    # every generation's physical VMEM (64 MiB/TC on v7x).
    lane_pad = ((block_rows + 127) // 128) * 128
    footprint = (4 * block_rows * padded_D * itemsize     # o1/o2, double-buffered
                 + 2 * 2 * 8 * lane_pad * 4               # label, double-buffered
                 + 8 * lane_pad * 4)                      # accumulator scratch
    vmem_limit = int(min(48 * _MIB, max(32 * _MIB, footprint + 4 * _MIB)))

    out = pl.pallas_call(
        kernel,
        out_shape=jax.ShapeDtypeStruct((num_splits, 1, 1), jnp.float32),
        grid=(num_splits, steps),
        in_specs=[
            pl.BlockSpec((block_rows, D), lambda c, i: (blk(c, i), 0)),
            pl.BlockSpec((block_rows, D), lambda c, i: (blk(c, i), 0)),
            pl.BlockSpec((1, block_rows), lambda c, i: (0, blk(c, i))),
        ],
        out_specs=pl.BlockSpec((1, 1, 1), lambda c, i: (c, 0, 0)),
        scratch_shapes=[pltpu.VMEM((1, block_rows), jnp.float32)],
        compiler_params=pltpu.CompilerParams(
            # Leading split axis -> separate TensorCores on v7x / megacore chips;
            # the batch-block axis carries the accumulator -> "arbitrary".
            dimension_semantics=("parallel", "arbitrary"),
            vmem_limit_bytes=vmem_limit,
        ),
        cost_estimate=pl.CostEstimate(
            flops=5 * B * D + 12 * B,
            transcendentals=B,
            bytes_accessed=2 * B * D * itemsize + 4 * B + 4 * num_splits,
        ),
    )(output1, output2, label_lane)

    # Combine per-split partial sums -> mean over the batch.
    return jnp.sum(out) * (1.0 / B)


def contrastive_loss_ref(output1, output2, label, margin=1.0):
    # Pure-JAX reference mirroring PyTorch semantics.
    diff = output1.astype(jnp.float32) - output2.astype(jnp.float32) + EPS
    d = jnp.sqrt(jnp.sum(diff * diff, axis=-1))
    hinge = jnp.maximum(margin - d, 0.0)
    return jnp.mean((1.0 - label) * d ** 2 + label * hinge ** 2)


if __name__ == "__main__":
    key = jax.random.PRNGKey(0)
    k1, k2, k3 = jax.random.split(key, 3)

    # 1) Multi-tile streaming reduction with a 2-way split (grid (2, 2));
    #    the padded 4th logical tile is index-clamped and fully masked.
    B, D = 384, 64
    o1 = jax.random.normal(k1, (B, D), dtype=jnp.float32)
    o2 = jax.random.normal(k2, (B, D), dtype=jnp.float32)
    lbl = jax.random.bernoulli(k3, p=0.5, shape=(B,)).astype(jnp.float32)
    loss = jax.block_until_ready(contrastive_loss(o1, o2, lbl, block_rows=128))
    ref = contrastive_loss_ref(o1, o2, lbl)
    assert jnp.allclose(loss, ref, rtol=1e-5, atol=1e-5), (loss, ref)

    # 2) Ragged batch: only the last tile is partially out of bounds and masked.
    B2 = 200
    o1b = jax.random.normal(k1, (B2, D), dtype=jnp.float32)
    o2b = jax.random.normal(k2, (B2, D), dtype=jnp.float32)
    lblb = jax.random.bernoulli(k3, p=0.5, shape=(B2,)).astype(jnp.float32)
    loss2 = jax.block_until_ready(contrastive_loss(o1b, o2b, lblb, block_rows=128))
    ref2 = contrastive_loss_ref(o1b, o2b, lblb)
    assert jnp.allclose(loss2, ref2, rtol=1e-5, atol=1e-5), (loss2, ref2)

    # 3) Tiny full-batch block (original module scale), default tile selection,
    #    larger margin so the hinge branch is numerically exercised.
    B3, D3 = 8, 32
    o1c = jax.random.normal(k1, (B3, D3), dtype=jnp.float32)
    o2c = jax.random.normal(k2, (B3, D3), dtype=jnp.float32)
    lblc = jax.random.bernoulli(k3, p=0.5, shape=(B3,)).astype(jnp.float32)
    loss3 = jax.block_until_ready(contrastive_loss(o1c, o2c, lblc, margin=10.0))
    ref3 = contrastive_loss_ref(o1c, o2c, lblc, margin=10.0)
    assert jnp.allclose(loss3, ref3, rtol=1e-5, atol=1e-5), (loss3, ref3)

    # 4) bf16 inputs streamed at native width, upcast inside the kernel.
    loss4 = jax.block_until_ready(
        contrastive_loss(o1.astype(jnp.bfloat16), o2.astype(jnp.bfloat16), lbl,
                         block_rows=128))
    ref4 = contrastive_loss_ref(o1.astype(jnp.bfloat16), o2.astype(jnp.bfloat16), lbl)
    assert jnp.allclose(loss4, ref4, rtol=1e-4, atol=1e-4), (loss4, ref4)

    print("KERNEL_OK")
</pallas_src>

<mosaic_0001>
module attributes {stable_mosaic.version = 11 : i64} {
  func.func @_contrastive_loss_kernel(%arg0: i32, %arg1: i32, %arg2: memref<128x64xf32, #tpu.memory_space<vmem>>, %arg3: memref<128x64xf32, #tpu.memory_space<vmem>>, %arg4: memref<1x128xf32, #tpu.memory_space<vmem>>, %arg5: memref<1x1x1xf32, #tpu.memory_space<vmem>>, %arg6: memref<1x128xf32, #tpu.memory_space<vmem>>) attributes {dimension_semantics = [#tpu.dimension_semantics<parallel>, #tpu.dimension_semantics<arbitrary>], iteration_bounds = array<i64: 2, 2>, scalar_prefetch = 0 : i64, scratch_operands = 1 : i64, tpu.core_type = #tpu.core_type<tc>, window_params = [{transform_indices = @transform_0, window_bounds = array<i64: 128, 64>}, {transform_indices = @transform_1, window_bounds = array<i64: 128, 64>}, {transform_indices = @transform_2, window_bounds = array<i64: 1, 128>}, {transform_indices = @transform_3, window_bounds = array<i64: 1, 1, 1>}]} {
    %c0_i32 = arith.constant 0 : i32
    %0 = arith.cmpi eq, %arg1, %c0_i32 : i32
    %1 = arith.extui %0 : i1 to i32
    %c0_i32_0 = arith.constant 0 : i32
    %2 = arith.cmpi ne, %1, %c0_i32_0 : i32
    scf.if %2 {
      %cst_17 = arith.constant 0.000000e+00 : f32
      %37 = vector.broadcast %cst_17 : f32 to vector<1x128xf32>
      %c0_18 = arith.constant 0 : index
      %c0_19 = arith.constant 0 : index
      %38 = vector.load %arg6[%c0_18, %c0_19] : memref<1x128xf32, #tpu.memory_space<vmem>>, vector<1x128xf32>
      tpu.vector_store %arg6[%c0_18, %c0_19], %37 {strides = array<i32>} : memref<1x128xf32, #tpu.memory_space<vmem>>, vector<1x128xf32>,
    } else {
    }
    %c0 = arith.constant 0 : index
    %c0_1 = arith.constant 0 : index
    %3 = vector.load %arg2[%c0, %c0_1] : memref<128x64xf32, #tpu.memory_space<vmem>>, vector<128x64xf32>
    %c0_2 = arith.constant 0 : index
    %c0_3 = arith.constant 0 : index
    %4 = vector.load %arg3[%c0_2, %c0_3] : memref<128x64xf32, #tpu.memory_space<vmem>>, vector<128x64xf32>
    %5 = arith.subf %3, %4 : vector<128x64xf32>
    %cst = arith.constant 9.99999997E-7 : f32
    %6 = vector.broadcast %cst : f32 to vector<128x64xf32>
    %7 = arith.addf %5, %6 : vector<128x64xf32>
    %8 = arith.mulf %7, %7 : vector<128x64xf32>
    %cst_4 = arith.constant 1.000000e+00 : f32
    %9 = vector.broadcast %cst_4 : f32 to vector<1x64xf32>
    %cst_5 = arith.constant dense<0.000000e+00> : vector<1x128xf32>
    %10 = tpu.matmul %9, %8, %cst_5 {dimension_numbers = #tpu.dot_dimension_numbers<[1], [1], [0], [0], [0, 0, 1, 0], [], []>, precision = #tpu.contract_precision<fp32>} : vector<1x64xf32>, vector<128x64xf32>, vector<1x128xf32> -> vector<1x128xf32>
    %11 = math.sqrt %10 : vector<1x128xf32>
    %c0_6 = arith.constant 0 : index
    %c0_7 = arith.constant 0 : index
    %12 = vector.load %arg4[%c0_6, %c0_7] : memref<1x128xf32, #tpu.memory_space<vmem>>, vector<1x128xf32>
    %cst_8 = arith.constant 1.000000e+00 : f32
    %13 = vector.broadcast %cst_8 : f32 to vector<1x128xf32>
    %14 = arith.subf %13, %11 : vector<1x128xf32>
    %cst_9 = arith.constant 0.000000e+00 : f32
    %15 = vector.broadcast %cst_9 : f32 to vector<1x128xf32>
    %16 = arith.maximumf %14, %15 : vector<1x128xf32>
    %cst_10 = arith.constant 1.000000e+00 : f32
    %17 = vector.broadcast %cst_10 : f32 to vector<1x128xf32>
    %18 = arith.subf %17, %12 : vector<1x128xf32>
    %19 = arith.mulf %18, %10 : vector<1x128xf32>
    %20 = arith.mulf %16, %16 : vector<1x128xf32>
    %21 = arith.mulf %12, %20 : vector<1x128xf32>
    %22 = arith.addf %19, %21 : vector<1x128xf32>
    %c2_i32 = arith.constant 2 : i32
    %23 = arith.muli %arg0, %c2_i32 : i32
    %24 = arith.addi %23, %arg1 : i32
    %c128_i32 = arith.constant 128 : i32
    %25 = arith.muli %24, %c128_i32 : i32
    %c128_i32_11 = arith.constant 128 : i32
    %26 = arith.addi %25, %c128_i32_11 : i32
    %c384_i32 = arith.constant 384 : i32
    %27 = arith.cmpi sle, %26, %c384_i32 : i32
    %28 = arith.extui %27 : i1 to i32
    %c0_i32_12 = arith.constant 0 : i32
    %29 = arith.cmpi ne, %28, %c0_i32_12 : i32
    scf.if %29 {
      %c0_17 = arith.constant 0 : index
      %c0_18 = arith.constant 0 : index
      %37 = vector.load %arg6[%c0_17, %c0_18] : memref<1x128xf32, #tpu.memory_space<vmem>>, vector<1x128xf32>
      %38 = arith.addf %37, %22 : vector<1x128xf32>
      %c0_19 = arith.constant 0 : index
      %c0_20 = arith.constant 0 : index
      %39 = vector.load %arg6[%c0_19, %c0_20] : memref<1x128xf32, #tpu.memory_space<vmem>>, vector<1x128xf32>
      tpu.vector_store %arg6[%c0_19, %c0_20], %38 {strides = array<i32>} : memref<1x128xf32, #tpu.memory_space<vmem>>, vector<1x128xf32>,
    } else {
    }
    %c128_i32_13 = arith.constant 128 : i32
    %30 = arith.addi %25, %c128_i32_13 : i32
    %c384_i32_14 = arith.constant 384 : i32
    %31 = arith.cmpi sgt, %30, %c384_i32_14 : i32
    %32 = arith.extui %31 : i1 to i32
    %c0_i32_15 = arith.constant 0 : i32
    %33 = arith.cmpi ne, %32, %c0_i32_15 : i32
    scf.if %33 {
      %37 = tpu.iota {dimensions = array<i32: 1>} : vector<1x128xi32>
      %c0_17 = arith.constant 0 : index
      %c0_18 = arith.constant 0 : index
      %38 = vector.load %arg6[%c0_17, %c0_18] : memref<1x128xf32, #tpu.memory_space<vmem>>, vector<1x128xf32>
      %39 = vector.broadcast %25 : i32 to vector<1x128xi32>
      %40 = arith.addi %39, %37 : vector<1x128xi32>
      %c384_i32_19 = arith.constant 384 : i32
      %41 = vector.broadcast %c384_i32_19 : i32 to vector<1x128xi32>
      %42 = arith.cmpi slt, %40, %41 : vector<1x128xi32>
      %cst_20 = arith.constant 0.000000e+00 : f32
      %43 = vector.broadcast %cst_20 : f32 to vector<1x128xf32>
      %44 = arith.select %42, %22, %43 : vector<1x128xi1>, vector<1x128xf32>
      %45 = arith.addf %38, %44 : vector<1x128xf32>
      %c0_21 = arith.constant 0 : index
      %c0_22 = arith.constant 0 : index
      %46 = vector.load %arg6[%c0_21, %c0_22] : memref<1x128xf32, #tpu.memory_space<vmem>>, vector<1x128xf32>
      tpu.vector_store %arg6[%c0_21, %c0_22], %45 {strides = array<i32>} : memref<1x128xf32, #tpu.memory_space<vmem>>, vector<1x128xf32>,
    } else {
    }
    %c1_i32 = arith.constant 1 : i32
    %34 = arith.cmpi eq, %arg1, %c1_i32 : i32
    %35 = arith.extui %34 : i1 to i32
    %c0_i32_16 = arith.constant 0 : i32
    %36 = arith.cmpi ne, %35, %c0_i32_16 : i32
    scf.if %36 {
      %c0_17 = arith.constant 0 : index
      %c0_18 = arith.constant 0 : index
      %37 = vector.load %arg6[%c0_17, %c0_18] : memref<1x128xf32, #tpu.memory_space<vmem>>, vector<1x128xf32>
      %38 = vector.shape_cast %37 : vector<1x128xf32> to vector<1x1x128xf32>
      %cst_19 = arith.constant dense<0.000000e+00> : vector<1xf32>
      %39 = vector.multi_reduction <add>, %38, %cst_19 [1, 2] : vector<1x1x128xf32> to vector<1xf32>
      %40 = vector.shape_cast %39 : vector<1xf32> to vector<1x1x1xf32>
      %41 = vector.extract %40[0, 0, 0] : f32 from vector<1x1x1xf32>
      %42 = vector.broadcast %41 : f32 to vector<1x1x1xf32>
      %c0_20 = arith.constant 0 : index
      %c0_21 = arith.constant 0 : index
      %c0_22 = arith.constant 0 : index
      %43 = vector.load %arg5[%c0_20, %c0_21, %c0_22] : memref<1x1x1xf32, #tpu.memory_space<vmem>>, vector<1x1x1xf32>
      tpu.vector_store %arg5[%c0_20, %c0_21, %c0_22], %42 {strides = array<i32>} : memref<1x1x1xf32, #tpu.memory_space<vmem>>, vector<1x1x1xf32>,
    } else {
    }
    return
  }
  func.func @transform_0(%arg0: i32, %arg1: i32) -> (i32, i32) {
    %c2_i32 = arith.constant 2 : i32
    %0 = arith.muli %arg0, %c2_i32 : i32
    %1 = arith.addi %0, %arg1 : i32
    %c2_i32_0 = arith.constant 2 : i32
    %2 = arith.minsi %1, %c2_i32_0 : i32
    %c0_i32 = arith.constant 0 : i32
    %c0_i32_1 = arith.constant 0 : i32
    return %2, %c0_i32 : i32, i32
  }
  func.func @transform_1(%arg0: i32, %arg1: i32) -> (i32, i32) {
    %c2_i32 = arith.constant 2 : i32
    %0 = arith.muli %arg0, %c2_i32 : i32
    %1 = arith.addi %0, %arg1 : i32
    %c2_i32_0 = arith.constant 2 : i32
    %2 = arith.minsi %1, %c2_i32_0 : i32
    %c0_i32 = arith.constant 0 : i32
    %c0_i32_1 = arith.constant 0 : i32
    return %2, %c0_i32 : i32, i32
  }
  func.func @transform_2(%arg0: i32, %arg1: i32) -> (i32, i32) {
    %c2_i32 = arith.constant 2 : i32
    %0 = arith.muli %arg0, %c2_i32 : i32
    %1 = arith.addi %0, %arg1 : i32
    %c2_i32_0 = arith.constant 2 : i32
    %2 = arith.minsi %1, %c2_i32_0 : i32
    %c0_i32 = arith.constant 0 : i32
    %c0_i32_1 = arith.constant 0 : i32
    return %c0_i32, %2 : i32, i32
  }
  func.func @transform_3(%arg0: i32, %arg1: i32) -> (i32, i32, i32) {
    %c0_i32 = arith.constant 0 : i32
    %c0_i32_0 = arith.constant 0 : i32
    %c0_i32_1 = arith.constant 0 : i32
    return %arg0, %c0_i32, %c0_i32_0 : i32, i32, i32
  }
}

</mosaic_0001>

<bundles_post_ra>
// kernel: tpu_custom_call.1
= control target key start
LH: loop header
LB: loop body
LE: loop exit
PB: predicated region body
PF: predicated region fallthrough
CT: control target
= control target key end

     0   :  { %s1063_s12 = smov 0   ;;  %s1065_s13 = smov 0   ;;  %s1437_s0 = inlined_call_operand.vmem [shape: f32[384,64], index: 0, kind: input, shape index: {}]   ;;  %s1438_s1 = inlined_call_operand.vmem [shape: f32[384,64], index: 1, kind: input, shape index: {}]   ;;  %s1439_s2 = inlined_call_operand.vmem [shape: f32[1,384], index: 2, kind: input, shape index: {}]   ;;  %s1440_s3 = inlined_call_operand.vmem [shape: f32[2,1,1], index: 3, kind: output, shape index: {}]  }
   0x1   :  { %s1067_s14 = smov 0   ;;  %s1069_s15 = smov 0  }
   0x2   :  { %s1071_s16 = smov 0  }
   0x3 LB: > { %s22_s17 = sadd.s32 1, %s1030_s14  ;;  %s25_s18 = sadd.s32 1, %s1034_s15  ;;  %s1038_s16 = sphi %s1071_s16, %s13_s16   ;;  %s1034_s15 = sphi %s1069_s15, %s1444_s15   ;;  %s1030_s14 = sphi %s1067_s14, %s1443_s14   ;;  %s1026_s13 = sphi %s1065_s13, %s1442_s13   ;;  %s1022_s12 = sphi %s1063_s12, %s1441_s12  }
   0x4   : > { %p23_p0 = scmp.ge.s32.totalorder %s22_s17, 2  ;;  %p931_p1 = scmp.ge.s32.totalorder %s1038_s16, 1 }
   0x5   : > { %p217_p2 = scmp.lt.s32.totalorder %s1038_s16, 5 }
   0x6   : > { %s1446_s17 = smov (%p23_p0, %s22_s17), 0  ;;  %s1448_s18 = smov (!%p23_p0, %s25_s18), %s1034_s15 }
   0x7   : > { %p218_p3 = pnand %p931_p1, %p217_p2  ;;  %p27_p4 = scmp.ge.s32.totalorder %s1448_s18, 2 }
   0x8   : > { %s932_s19 = sshll.u32 (!%p218_p3), %s1026_s13, 1  ;;  %p298_p5 = scmp.lt.s32.totalorder (!%p218_p3), %s1026_s13, 1 }
   0x9   : > { %s1450_s18 = smov (%p27_p4, %s1448_s18), 0  ;;  %221 = sbr.rel (%p218_p3) target bundleno = 541 (0x21d), region = 32 }
   0xa   : > { %s1096_s20 = sadd.s32 (!%p218_p3), %s1022_s12, %s932_s19  ;;  %p942_p8 = scmp.ne.s32.totalorder (!%p218_p3), %s1022_s12, 0 }
   0xb   : > { %p261_p6 = scmp.lt.s32.totalorder (!%p218_p3), %s1096_s20, 2 }
   0xe   : > { %s1452_s13 = smov (!%p298_p5, %s1026_s13), 1 }
   0xf   : > { %s262_s21 = scalar_select %p261_p6, %s1096_s20, 2 }
  0x10   : > { %s300_s24 = scalar_lea.vmem %s1440_s3, %s1452_s13 }
  0x11   : > { %s933_s25 = sshll.u32 %s262_s21, 4  ;;  %s1454_s21 = smov (!%p261_p6, %s262_s21), 2 }
  0x12   : > { %p264_p7 = scmp.lt.s32.totalorder %s933_s25, 47  ;;  %s293_s28 = scalar_lea.vmem %s1439_s2, %s1454_s21 }
  0x13   : > { %304 = sbr.rel (%p942_p8) target bundleno = 26 (0x1a), region = 36 }
  0x14   : > { %s1456_s25 = smov (!%p264_p7, %s933_s25), 47 }
  0x15   : > { %s934_s29 = sshll.u32 %s1456_s25, 3 }
  0x16   : > { %s1115_s5 = scalar_lea.vmem %s1437_s0, %s934_s29  ;;  %s1120_s8 = scalar_lea.vmem %s1438_s1, %s934_s29 }
  0x18   : > { %v1040_v0 = vmov 0.0  }
  0x19   : > { %305 = vst [vmem:[#allocation2] sm:$0x1] %v1040_v0 }
  0x1a PF: > { %v321_v1 = vld [vmem:[%s1115_s5 + $0x78] sm:$0xff]  ;;  %v320_v3 = vld [vmem:[%s1115_s5 + $0x70] sm:$0xff]  ;;  %v319_v6 = vld [vmem:[%s1115_s5 + $0x68] sm:$0xff]  ;;  %vm386_vm0 = vcmask 523264   ;;  %s947_s9 = sshll.u32 %s1096_s20, 7 }
  0x1b   : > { %v337_v2 = vld [vmem:[%s1120_s8 + $0x78] sm:$0xff]  ;;  %v336_v5 = vld [vmem:[%s1120_s8 + $0x70] sm:$0xff]  ;;  %v335_v7 = vld [vmem:[%s1120_s8 + $0x68] sm:$0xff]  ;;  %s1405_s10 = sadd.s32 128, %s947_s9 }
  0x1c   : > { %v353_v4 = vsub.f32 %v321_v1, %v337_v2  ;;  %v352_v8 = vsub.f32 %v320_v3, %v336_v5  ;;  %v351_v9 = vsub.f32 %v319_v6, %v335_v7  ;;  %v318_v10 = vld [vmem:[%s1115_s5 + $0x60] sm:$0xff]  ;;  %v317_v12 = vld [vmem:[%s1115_s5 + $0x58] sm:$0xff]  ;;  %v316_v16 = vld [vmem:[%s1115_s5 + $0x50] sm:$0xff]  ;;  %p948_p9 = scmp.gt.s32.totalorder %s1405_s10, 384 }
  0x1d   : > { %v334_v11 = vld [vmem:[%s1120_s8 + $0x60] sm:$0xff]  ;;  %v333_v15 = vld [vmem:[%s1120_s8 + $0x58] sm:$0xff]  ;;  %v332_v17 = vld [vmem:[%s1120_s8 + $0x50] sm:$0xff] }
  0x1e   : > { %v369_v13 = vadd.f32 1e-06, %v353_v4  ;;  %v350_v14 = vsub.f32 %v318_v10, %v334_v11  ;;  %v368_v18 = vadd.f32 1e-06, %v352_v8  ;;  %v367_v19 = vadd.f32 1e-06, %v351_v9 }
  0x1f   : > { %v349_v20 = vsub.f32 %v317_v12, %v333_v15  ;;  %v348_v21 = vsub.f32 %v316_v16, %v332_v17  ;;  %v315_v22 = vld [vmem:[%s1115_s5 + $0x48] sm:$0xff]  ;;  %v314_v31 = vld [vmem:[%s1115_s5 + $0x40] sm:$0xff]  ;;  %v313_v60 = vld [vmem:[%s1115_s5 + $0x38] sm:$0xff] }
  0x20   : > { %v331_v23 = vld [vmem:[%s1120_s8 + $0x48] sm:$0xff]  ;;  %v385_v24 = vmul.f32 %v369_v13, %v369_v13  ;;  %v366_v25 = vadd.f32 1e-06, %v350_v14  ;;  %v384_v27 = vmul.f32 %v368_v18, %v368_v18  ;;  %v383_v28 = vmul.f32 %v367_v19, %v367_v19  ;;  %v330_v32 = vld [vmem:[%s1120_s8 + $0x40] sm:$0xff]  ;;  %v329_v61 = vld [vmem:[%s1120_s8 + $0x38] sm:$0xff] }
  0x21   : > { %v347_v26 = vsub.f32 %v315_v22, %v331_v23  ;;  %v365_v29 = vadd.f32 1e-06, %v349_v20  ;;  %v364_v30 = vadd.f32 1e-06, %v348_v21  ;;  %v346_v43 = vsub.f32 %v314_v31, %v330_v32  ;;  %v312_v63 = vld [vmem:[%s1115_s5 + $0x30] sm:$0xff]  ;;  %v311_v11 = vld [vmem:[%s1115_s5 + $0x28] sm:$0xff] }
  0x22   : > { %v436_v33 = vsel %vm386_vm0, %v385_v24, 0  ;;  %v382_v34 = vmul.f32 %v366_v25, %v366_v25  ;;  %v433_v37 = vsel %vm386_vm0, %v384_v27, 0  ;;  %v430_v38 = vsel %vm386_vm0, %v383_v28, 0  ;;  %v328_v0 = vld [vmem:[%s1120_s8 + $0x30] sm:$0xff]  ;;  %v327_v12 = vld [vmem:[%s1120_s8 + $0x28] sm:$0xff]  ;;  %v310_v22 = vld [vmem:[%s1115_s5 + $0x20] sm:$0xff] }
  0x23   : > { %v363_v35 = vadd.f32 1e-06, %v347_v26  ;;  %v1140_v36 = vand.u32 4294901760, %v436_v33  ;;  %v381_v39 = vmul.f32 %v365_v29, %v365_v29  ;;  %v1144_v40 = vand.u32 4294901760, %v433_v37  ;;  %v326_v23 = vld [vmem:[%s1120_s8 + $0x20] sm:$0xff]  ;;  %v325_v31 = vld [vmem:[%s1120_s8 + $0x18] sm:$0xff] }
  0x24   : > { %v1146_v41 = vand.u32 4294901760, %v430_v38  ;;  %v427_v42 = vsel %vm386_vm0, %v382_v34, 0  ;;  %v380_v47 = vmul.f32 %v364_v30, %v364_v30  ;;  %v362_v58 = vadd.f32 1e-06, %v346_v43  ;;  %v309_v30 = vld [vmem:[%s1115_s5 + $0x18] sm:$0xff] }
  0x25   : > { %439 = vmatpush.xpose.msra.mxu0 %v1140_v36  ;;  %v1151_v44 = vsub.f32 %v436_v33, %v1140_v36  ;;  %v1153_v45 = vand.u32 4294901760, %v427_v42  ;;  %v424_v46 = vsel %vm386_vm0, %v381_v39, 0  ;;  %635 = vmatpush.xpose.msra.mxu3 %v1140_v36  ;;  %v1158_v48 = vsub.f32 %v433_v37, %v1144_v40 }
  0x26   : > { %v1161_v49 = vsub.f32 %v430_v38, %v1146_v41  ;;  %v1166_v52 = vand.u32 4294901760, %v424_v46  ;;  %v379_v54 = vmul.f32 %v363_v35, %v363_v35  ;;  %v421_v57 = vsel %vm386_vm0, %v380_v47, 0  ;;  %v308_v47 = vld [vmem:[%s1115_s5 + $0x10] sm:$0xff] }
  0x27   : > { %v481_v50 = vand.u32 4294901760, %v1151_v44  ;;  %582 = vmatpush.xpose.msra.mxu2 %v1151_v44  ;;  %v487_v51 = vand.u32 4294901760, %v1158_v48  ;;  %v1169_v53 = vsub.f32 %v427_v42, %v1153_v45  ;;  %v1187_v2 = vand.u32 4294901760, %v421_v57 }
  0x28   : > { %v493_v56 = vand.u32 4294901760, %v1161_v49  ;;  %v1190_v3 = vsub.f32 %v424_v46, %v1166_v52  ;;  %v418_v4 = vsel %vm386_vm0, %v379_v54, 0  ;;  %v378_v7 = vmul.f32 %v362_v58, %v362_v58  ;;  %v324_v54 = vld [vmem:[%s1120_s8 + $0x10] sm:$0xff] }
  0x29   : > { %441 = vmatpush.xpose.msra.mxu0 %v1144_v40  ;;  %v482_v55 = vsub.f32 %v1151_v44, %v481_v50  ;;  %637 = vmatpush.xpose.msra.mxu3 %v1144_v40  ;;  %v488_v59 = vsub.f32 %v1158_v48, %v487_v51  ;;  %v499_v1 = vand.u32 4294901760, %v1169_v53  ;;  %v345_v8 = vsub.f32 %v313_v60, %v329_v61 }
  0x2a   : > { %v494_v6 = vsub.f32 %v1161_v49, %v493_v56  ;;  %v344_v9 = vsub.f32 %v312_v63, %v328_v0  ;;  %v1201_v13 = vand.u32 4294901760, %v418_v4  ;;  %v1204_v14 = vsub.f32 %v421_v57, %v1187_v2 }
  0x2b   : > { %v483_v62 = vand.u32 4294901760, %v482_v55  ;;  %585 = vmatpush.xpose.msra.mxu2 %v1158_v48  ;;  %v489_v5 = vand.u32 4294901760, %v488_v59  ;;  %v361_v10 = vadd.f32 1e-06, %v345_v8  ;;  %v500_v16 = vsub.f32 %v1169_v53, %v499_v1 }
  0x2c   : > { %v495_v15 = vand.u32 4294901760, %v494_v6  ;;  %v505_v17 = vand.u32 4294901760, %v1190_v3  ;;  %v415_v18 = vsel %vm386_vm0, %v378_v7, 0  ;;  %v360_v20 = vadd.f32 1e-06, %v344_v9  ;;  %v307_v6 = vld [vmem:[%s1115_s5 + $0x8] sm:$0xff] }
  0x2d   : > { %484 = vmatpush.xpose.msra.mxu1 %v483_v62  ;;  %443 = vmatpush.xpose.msra.mxu0 %v1146_v41  ;;  %v377_v19 = vmul.f32 %v361_v10, %v361_v10  ;;  %v343_v21 = vsub.f32 %v311_v11, %v327_v12  ;;  %v1216_v24 = vand.u32 4294901760, %v415_v18  ;;  %v1219_v25 = vsub.f32 %v418_v4, %v1201_v13  ;;  %v323_v7 = vld [vmem:[%s1120_s8 + $0x8] sm:$0xff] }
  0x2e   : > { %639 = vmatpush.xpose.msra.mxu3 %v1146_v41  ;;  %v501_v26 = vand.u32 4294901760, %v500_v16  ;;  %v506_v27 = vsub.f32 %v1190_v3, %v505_v17  ;;  %v511_v28 = vand.u32 4294901760, %v1204_v14  ;;  %v342_v29 = vsub.f32 %v310_v22, %v326_v23 }
  0x2f   : > { %588 = vmatpush.xpose.msra.mxu2 %v1161_v49  ;;  %v412_v32 = vsel %vm386_vm0, %v377_v19, 0  ;;  %v376_v33 = vmul.f32 %v360_v20, %v360_v20  ;;  %v359_v34 = vadd.f32 1e-06, %v343_v21  ;;  %v517_v35 = vand.u32 4294901760, %v1219_v25  ;;  %v306_v20 = vld [vmem:[%s1115_s5] sm:$0xff] }
  0x30   : > { %v1233_v37 = vsub.f32 %v415_v18, %v1216_v24  ;;  %v341_v38 = vsub.f32 %v309_v30, %v325_v31  ;;  %v507_v39 = vand.u32 4294901760, %v506_v27  ;;  %v512_v42 = vsub.f32 %v1204_v14, %v511_v28  ;;  %v322_v21 = vld [vmem:[%s1120_s8] sm:$0xff] }
  0x31   : > { %490 = vmatpush.xpose.msra.mxu1 %v489_v5  ;;  %445 = vmatpush.xpose.msra.mxu0 %v1153_v45  ;;  %v1239_v43 = vand.u32 4294901760, %v412_v32  ;;  %v358_v46 = vadd.f32 1e-06, %v342_v29  ;;  %v409_v55 = vsel %vm386_vm0, %v376_v33, 0  ;;  %v375_v57 = vmul.f32 %v359_v34, %v359_v34 }
  0x32   : > { %641 = vmatpush.xpose.msra.mxu3 %v1153_v45  ;;  %v518_v58 = vsub.f32 %v1219_v25, %v517_v35  ;;  %v523_v59 = vand.u32 4294901760, %v1233_v37  ;;  %v357_v60 = vadd.f32 1e-06, %v341_v38  ;;  %v340_v61 = vsub.f32 %v308_v47, %v324_v54 }
  0x33   : > { %591 = vmatpush.xpose.msra.mxu2 %v1169_v53  ;;  %v513_v62 = vand.u32 4294901760, %v512_v42  ;;  %v1251_v63 = vand.u32 4294901760, %v409_v55  ;;  %v1254_v0 = vsub.f32 %v412_v32, %v1239_v43  ;;  %v374_v4 = vmul.f32 %v358_v46, %v358_v46 }
  0x34   : > { %v406_v5 = vsel %vm386_vm0, %v375_v57, 0  ;;  %v519_v8 = vand.u32 4294901760, %v518_v58  ;;  %v524_v9 = vsub.f32 %v1233_v37, %v523_v59  ;;  %v373_v10 = vmul.f32 %v357_v60, %v357_v60 }
  0x35   : > { %496 = vmatpush.xpose.msra.mxu1 %v495_v15  ;;  %447 = vmatpush.xpose.msra.mxu0 %v1166_v52  ;;  %v356_v11 = vadd.f32 1e-06, %v340_v61  ;;  %v529_v12 = vand.u32 4294901760, %v1254_v0  ;;  %v1266_v15 = vand.u32 4294901760, %v406_v5  ;;  %v1269_v16 = vsub.f32 %v409_v55, %v1251_v63 }
  0x36   : > { %643 = vmatpush.xpose.msra.mxu3 %v1166_v52  ;;  %v403_v18 = vsel %vm386_vm0, %v374_v4, 0  ;;  %v339_v19 = vsub.f32 %v307_v6, %v323_v7  ;;  %v525_v22 = vand.u32 4294901760, %v524_v9  ;;  %v400_v31 = vsel %vm386_vm0, %v373_v10, 0 }
  0x37   : > { %594 = vmatpush.xpose.msra.mxu2 %v1190_v3  ;;  %v1276_v23 = vand.u32 4294901760, %v403_v18  ;;  %v530_v27 = vsub.f32 %v1254_v0, %v529_v12  ;;  %v535_v29 = vand.u32 4294901760, %v1269_v16  ;;  %v1284_v30 = vsub.f32 %v406_v5, %v1266_v15 }
  0x38   : > { %v355_v32 = vadd.f32 1e-06, %v339_v19  ;;  %v338_v33 = vsub.f32 %v306_v20, %v322_v21  ;;  %v1289_v34 = vand.u32 4294901760, %v400_v31  ;;  %v1041_v44 = vmov 0  }
  0x39   : > { %502 = vmatpush.xpose.msra.mxu1 %v501_v26  ;;  %449 = vmatpush.xpose.msra.mxu0 %v1187_v2  ;;  %v372_v26 = vmul.f32 %v356_v11, %v356_v11  ;;  %v536_v42 = vsub.f32 %v1269_v16, %v535_v29  ;;  %v541_v46 = vand.u32 4294901760, %v1284_v30  ;;  %v1298_v47 = vsub.f32 %v403_v18, %v1276_v23 }
  0x3a   : > { %645 = vmatpush.xpose.msra.mxu3 %v1187_v2  ;;  %v371_v54 = vmul.f32 %v355_v32, %v355_v32  ;;  %v354_v55 = vadd.f32 1e-06, %v338_v33  ;;  %v388_v48 = vsel %vm386_vm0, 1.0, %v1041_v44 }
  0x3b   : > { %597 = vmatpush.xpose.msra.mxu2 %v1204_v14  ;;  %v397_v38 = vsel %vm386_vm0, %v372_v26, 0  ;;  %v537_v58 = vand.u32 4294901760, %v536_v42  ;;  %v542_v60 = vsub.f32 %v1284_v30, %v541_v46  ;;  %v547_v61 = vand.u32 4294901760, %v1298_v47 }
  0x3c   : > { %v1302_v57 = vand.u32 4294901760, %v397_v38  ;;  %v394_v4 = vsel %vm386_vm0, %v371_v54, 0  ;;  %v370_v5 = vmul.f32 %v354_v55, %v354_v55 }
  0x3d   : > { %508 = vmatpush.xpose.msra.mxu1 %v507_v39  ;;  %451 = vmatpush.xpose.msra.mxu0 %v1201_v13  ;;  %v531_v39 = vand.u32 4294901760, %v530_v27  ;;  %v543_v7 = vand.u32 4294901760, %v542_v60  ;;  %v1323_v10 = vand.u32 4294901760, %v394_v4 }
  0x3e   : > { %647 = vmatpush.xpose.msra.mxu3 %v1201_v13  ;;  %v1316_v6 = vsub.f32 %v397_v38, %v1302_v57  ;;  %v391_v11 = vsel %vm386_vm0, %v370_v5, 0 }
  0x3f   : > { %600 = vmatpush.xpose.msra.mxu2 %v1219_v25  ;;  %v1333_v21 = vand.u32 4294901760, %v391_v11 }
  0x40   : > { %v559_v18 = vand.u32 4294901760, %v1316_v6 }
  0x41   : > { %514 = vmatpush.xpose.msra.mxu1 %v513_v62  ;;  %453 = vmatpush.xpose.msra.mxu0 %v1216_v24  ;;  %v1310_v62 = vsub.f32 %v400_v31, %v1289_v34  ;;  %v570_v32 = vsub.f32 %v391_v11, %v1333_v21 }
  0x42   : > { %649 = vmatpush.xpose.msra.mxu3 %v1216_v24  ;;  %v560_v27 = vsub.f32 %v1316_v6, %v559_v18 }
  0x43   : > { %603 = vmatpush.xpose.msra.mxu2 %v1233_v37  ;;  %v553_v9 = vand.u32 4294901760, %v1310_v62 }
  0x44   : > { %v561_v33 = vand.u32 4294901760, %v560_v27 }
  0x45   : > { %520 = vmatpush.xpose.msra.mxu1 %v519_v8  ;;  %455 = vmatpush.xpose.msra.mxu0 %v1239_v43  ;;  %v548_v8 = vsub.f32 %v1298_v47, %v547_v61  ;;  %v554_v20 = vsub.f32 %v1310_v62, %v553_v9 }
  0x46   : > { %651 = vmatpush.xpose.msra.mxu3 %v1239_v43 }
  0x47   : > { %606 = vmatpush.xpose.msra.mxu2 %v1254_v0  ;;  %v549_v19 = vand.u32 4294901760, %v548_v8  ;;  %v555_v26 = vand.u32 4294901760, %v554_v20 }
  0x49   : > { %526 = vmatpush.xpose.msra.mxu1 %v525_v22  ;;  %457 = vmatpush.xpose.msra.mxu0 %v1251_v63  ;;  %v1336_v22 = vsub.f32 %v394_v4, %v1323_v10 }
  0x4a   : > { %653 = vmatpush.xpose.msra.mxu3 %v1251_v63 }
  0x4b   : > { %609 = vmatpush.xpose.msra.mxu2 %v1269_v16  ;;  %v565_v31 = vand.u32 4294901760, %v1336_v22 }
  0x4d   : > { %532 = vmatpush.xpose.msra.mxu1 %v531_v39  ;;  %459 = vmatpush.xpose.msra.mxu0 %v1266_v15  ;;  %v566_v38 = vsub.f32 %v1336_v22, %v565_v31  ;;  %v571_v39 = vand.u32 4294901760, %v570_v32 }
  0x4e   : > { %655 = vmatpush.xpose.msra.mxu3 %v1266_v15 }
  0x4f   : > { %612 = vmatpush.xpose.msra.mxu2 %v1284_v30  ;;  %v567_v42 = vand.u32 4294901760, %v566_v38  ;;  %v572_v54 = vsub.f32 %v570_v32, %v571_v39 }
  0x51   : > { %538 = vmatpush.xpose.msra.mxu1 %v537_v58  ;;  %461 = vmatpush.xpose.msra.mxu0 %v1276_v23  ;;  %v573_v55 = vand.u32 4294901760, %v572_v54 }
  0x52   : > { %657 = vmatpush.xpose.msra.mxu3 %v1276_v23 }
  0x53   : > { %615 = vmatpush.xpose.msra.mxu2 %v1298_v47 }
  0x55   : > { %544 = vmatpush.xpose.msra.mxu1 %v543_v7  ;;  %463 = vmatpush.xpose.msra.mxu0 %v1289_v34 }
  0x56   : > { %659 = vmatpush.xpose.msra.mxu3 %v1289_v34 }
  0x57   : > { %618 = vmatpush.xpose.msra.mxu2 %v1310_v62 }
  0x59   : > { %550 = vmatpush.xpose.msra.mxu1 %v549_v19  ;;  %465 = vmatpush.xpose.msra.mxu0 %v1302_v57 }
  0x5a   : > { %661 = vmatpush.xpose.msra.mxu3 %v1302_v57 }
  0x5b   : > { %621 = vmatpush.xpose.msra.mxu2 %v1316_v6 }
  0x5d   : > { %556 = vmatpush.xpose.msra.mxu1 %v555_v26  ;;  %467 = vmatpush.xpose.msra.mxu0 %v1323_v10 }
  0x5e   : > { %663 = vmatpush.xpose.msra.mxu3 %v1323_v10 }
  0x5f   : > { %624 = vmatpush.xpose.msra.mxu2 %v1336_v22 }
  0x61   : > { %562 = vmatpush.xpose.msra.mxu1 %v561_v33  ;;  %469 = vmatpush.xpose.msra.mxu0 %v1333_v21 }
  0x62   : > { %665 = vmatpush.xpose.msra.mxu3 %v1333_v21 }
  0x63   : > { %627 = vmatpush.xpose.msra.mxu2 %v570_v32 }
  0x65   : > { %676 = vmatpush.xpose.msrb.mxu0 %v481_v50  ;;  %568 = vmatpush.xpose.msra.mxu1 %v567_v42  ;;  %v471_v50 = vsub.f32 %v388_v48, %v388_v48 }
  0x67   : > { %630 = vmatmul.f32.vlgmr.msra.gmra.mxu2 %v471_v50 }
  0x69   : > { %680 = vmatpush.xpose.msrb.mxu0 %v487_v51  ;;  %574 = vmatpush.xpose.msra.mxu1 %v573_v55 }
  0x6d   : > { %743 = vmatpush.xpose.msrb.mxu1 %v1140_v36  ;;  %684 = vmatpush.xpose.msrb.mxu0 %v493_v56  ;;  %v472_v36 = vand.u32 4294901760, %v471_v50 }
  0x6f   : > { %669 = vmatmul.f32.vlgmr.msra.gmra.mxu3 %v472_v36 }
  0x71   : > { %745 = vmatpush.xpose.msrb.mxu1 %v1144_v40  ;;  %688 = vmatpush.xpose.msrb.mxu0 %v499_v1  ;;  %v473_v40 = vsub.f32 %v471_v50, %v472_v36 }
  0x75   : > { %747 = vmatpush.xpose.msrb.mxu1 %v1146_v41  ;;  %692 = vmatpush.xpose.msrb.mxu0 %v505_v17  ;;  %v474_v41 = vand.u32 4294901760, %v473_v40 }
  0x77   : > { %475 = vmatmul.f32.vlgmr.msra.gmra.mxu0 %v474_v41 }
  0x79   : > { %749 = vmatpush.xpose.msrb.mxu1 %v1153_v45  ;;  %696 = vmatpush.xpose.msrb.mxu0 %v511_v28  ;;  %v1042_v45 = vmov 1.0  }
  0x7a   : > { %943 = vmatmul.msk.f32.vlgmr.msra.gmra.mxu1 %vm386_vm0, %v1042_v45 }
  0x7d   : > { %751 = vmatpush.xpose.msrb.mxu1 %v1166_v52  ;;  %700 = vmatpush.xpose.msrb.mxu0 %v517_v35 }
  0x81   : > { %753 = vmatpush.xpose.msrb.mxu1 %v1187_v2  ;;  %704 = vmatpush.xpose.msrb.mxu0 %v523_v59 }
  0x85   : > { %755 = vmatpush.xpose.msrb.mxu1 %v1201_v13  ;;  %708 = vmatpush.xpose.msrb.mxu0 %v529_v12 }
  0x89   : > { %757 = vmatpush.xpose.msrb.mxu1 %v1216_v24  ;;  %712 = vmatpush.xpose.msrb.mxu0 %v535_v29 }
  0x8d   : > { %759 = vmatpush.xpose.msrb.mxu1 %v1239_v43  ;;  %716 = vmatpush.xpose.msrb.mxu0 %v541_v46 }
  0x91   : > { %761 = vmatpush.xpose.msrb.mxu1 %v1251_v63  ;;  %720 = vmatpush.xpose.msrb.mxu0 %v547_v61 }
  0x95   : > { %763 = vmatpush.xpose.msrb.mxu1 %v1266_v15  ;;  %724 = vmatpush.xpose.msrb.mxu0 %v553_v9  ;;  %v791_v15 = vld [vmem:[%s293_s28] sm:$0x1] }
  0x96   : > { %v794_v29 = vsub.f32 1.0, %v791_v15 }
  0x99   : > { %765 = vmatpush.xpose.msrb.mxu1 %v1276_v23  ;;  %728 = vmatpush.xpose.msrb.mxu0 %v559_v18 }
  0x9d   : > { %767 = vmatpush.xpose.msrb.mxu1 %v1289_v34  ;;  %732 = vmatpush.xpose.msrb.mxu0 %v565_v31 }
  0xa1   : > { %769 = vmatpush.xpose.msrb.mxu1 %v1302_v57  ;;  %736 = vmatpush.xpose.msrb.mxu0 %v571_v39 }
  0xa4   : > { %944 = vmatmul.msk.f32.vlgmr.msrb.gmra.mxu0 %vm386_vm0, %v1042_v45 }
  0xa5   : > { %771 = vmatpush.xpose.msrb.mxu1 %v1323_v10 }
  0xa9   : > { %773 = vmatpush.xpose.msrb.mxu1 %v1333_v21 }
  0xac   : > { %945 = vmatmul.msk.f32.vlgmr.msrb.gmra.mxu1 %vm386_vm0, %v1042_v45 }
  0xea   : > { %v631_v53 = vpop.f32.mrf.mxu2 }
  0xf2   : > { %v670_v1 = vpop.f32.mrf.mxu3 }
  0xf4   : > { %v476_v51 = vpop.f32.mrf.mxu0 }
  0xf7   : > { %v577_v49 = vpop.f32.mrf.mxu1 }
  0xf8   : > { %v578_v52 = vadd.f32 %v577_v49, %v476_v51 }
  0xfa   : > { %v632_v56 = vadd.f32 %v631_v53, %v578_v52 }
  0xfc   : > { %v671_v2 = vadd.f32 %v670_v1, %v632_v56 }
 0x121   : > { %v739_v3 = vpop.f32.mrf.mxu0 }
 0x122   : > { %v740_v13 = vadd.f32 %v739_v3, %v671_v2 }
 0x129   : > { %v776_v14 = vpop.f32.mrf.mxu1 }
 0x12a   : > { %v777_v17 = vadd.f32 %v776_v14, %v740_v13 }
 0x12c   : > { %998 = vrsqrt.f32 %v777_v17  ;;  %vm786_vm1 = vcmp.eq.f32.partialorder %v777_v17, inf  ;;  %v789_v63 = vand.u32 2147483648, %v777_v17  ;;  %vm788_vm2 = vcmp.eq.f32.partialorder %v777_v17, 0.0 }
 0x12d   : > { %v795_v34 = vmul.f32 %v794_v29, %v777_v17 }
 0x132   : > { %v999_v24 = vpop.eup %998 }
 0x133   : > { %v780_v25 = vmul.f32 %v999_v24, %v777_v17 }
 0x135   : > { %v781_v28 = vmul.f32 %v999_v24, %v780_v25 }
 0x137   : > { %v782_v35 = vmul.f32 0.5, %v781_v28 }
 0x139   : > { %v783_v37 = vsub.f32 1.5, %v782_v35 }
 0x13b   : > { %v784_v43 = vmul.f32 %v999_v24, %v783_v37 }
 0x13d   : > { %v785_v59 = vmul.f32 %v784_v43, %v777_v17 }
 0x13f   : > { %v787_v0 = vsel %vm786_vm1, %v777_v17, %v785_v59 }
 0x140   : > { %v790_v12 = vsel %vm788_vm2, %v789_v63, %v787_v0 }
 0x141   : > { %v792_v16 = vsub.f32 1.0, %v790_v12 }
 0x143   : > { %v793_v23 = vmax.f32 %v792_v16, 0.0 }
 0x145   : > { %v796_v30 = vmul.f32 %v793_v23, %v793_v23  ;;  %806 = sbr.rel (%p948_p9) target bundleno = 334 (0x14e), region = 40 }
 0x147   : > { %v797_v46 = vmul.f32 %v796_v30, %v791_v15 }
 0x149   : > { %v798_v47 = vadd.f32 %v797_v46, %v795_v34 }
 0x14a   : > { %v807_v57 = vld [vmem:[#allocation2] sm:$0x1] }
 0x14b   : > { %v808_v58 = vadd.f32 %v807_v57, %v798_v47 }
 0x14d   : > { %809 = vst [vmem:[#allocation2] sm:$0x1] %v808_v58 }
 0x14e PF: > { %p949_p10 = scmp.le.s32.totalorder %s1405_s10, 384 }
 0x150   : > { %813 = sbr.rel (%p949_p10) target bundleno = 352 (0x160), region = 44 }
 0x155   : > { %v814_v60 = vlaneseq  ;;  %v817_v61 = vstv %s947_s9  ;;  %v816_v5 = vld [vmem:[#allocation2] sm:$0x1] }
 0x157   : > { %v815_v62 = vand.u32 127, %v814_v60 }
 0x159   : > { %v818_v4 = vadd.s32 %v817_v61, %v815_v62 }
 0x15b   : > { %vm819_vm3 = vcmp.lt.s32.totalorder %v818_v4, 384 }
 0x15c   : > { %v820_v6 = vsel %vm819_vm3, %v798_v47, 0.0 }
 0x15d   : > { %v821_v7 = vadd.f32 %v820_v6, %v816_v5 }
 0x15f   : > { %822 = vst [vmem:[#allocation2] sm:$0x1] %v821_v7 }
 0x160 PF: > { %p950_p11 = scmp.ne.s32.totalorder %s1022_s12, 1 }
 0x162   : > { %826 = sbr.rel (%p950_p11) target bundleno = 541 (0x21d), region = 48 }
 0x167   : > { %v827_v8 = vld [vmem:[#allocation2] sm:$0x1]  ;;  %vm828_vm4 = vcmask 1040384   ;;  %vm840_vm5 = vcmask 0  }
 0x168   : > { %v829_v9 = vsel %vm828_vm4, %v827_v8, 0.0 }
 0x169   : > { %830 = vadd.xlane.f32.xlu0 %v829_v9 }
 0x1dc   : > { %v831_v10 = vpop.xlane.xlu0 %830 }
 0x1dd   : > { %v832_v11 = vrot.slane %v831_v10, 4 }
 0x1df   : > { %v833_v18 = vadd.f32 %v832_v11, %v831_v10 }
 0x1e1   : > { %v834_v19 = vrot.slane %v833_v18, 2 }
 0x1e3   : > { %v835_v20 = vadd.f32 %v834_v19, %v833_v18 }
 0x1e5   : > { %v836_v21 = vrot.slane %v835_v20, 1 }
 0x1e7   : > { %v837_v22 = vadd.f32 %v836_v21, %v835_v20 }
 0x1e9   : > { %953 = vpush %v837_v22 }
 0x21a   : > { %s954_s20 = spop %953 }
 0x21b   : > { %v839_v26 = vstv %s954_s20 }
 0x21c   : > { %841 = vst.msk [vmem:[%s300_s24] sm:$0x1] %vm840_vm5, %v839_v26 }
 0x21d PF: > { %s13_s16 = sadd.s32 1, %s1038_s16   ;;  %s1441_s12 = smov %s1030_s14 }
 0x21e   : > { %p10_p12 = scmp.ge.s32.totalorder %s13_s16, 6   ;;  %s1442_s13 = smov %s1034_s15 }
 0x21f   : > { %s1443_s14 = smov %s1446_s17  ;;  %s1444_s15 = smov %s1450_s18 }
 0x220   :  { %12 = sbr.rel (!%p10_p12) target bundleno = 3 (0x3), region = 84 }

</bundles_post_ra>
